<compile_context>
chip_gen: v7x
topology: tpu7x:2x2x1
jax: 0.10.0
libtpu: 0.0.40
codegen_flags: <defaults>
</compile_context>

<pallas_src>
import functools

import jax
import jax.numpy as jnp
from jax.experimental import pallas as pl
from jax.experimental.pallas import tpu as pltpu


def _ebconv_kernel(x_ref, w_ref, b_ref, o_ref, *,
                   K, stride, dilation, TOH, OW, C_in, C_out):
    """One grid step = (batch b, output-row tile t).

    x_ref : (1, C_in, H_pad, W_pad)   this batch's padded input (planar NCHW)
    w_ref : (1, C_out, K*K*C_in)      expert-0 weight, alpha2-folded (compute dtype)
    b_ref : (1, C_out, 1)             expert-0 bias, alpha2-folded (f32)
    o_ref : (1, C_out, TOH*OW)        NCHW-major, lane-dense output tile
    """
    t = pl.program_id(1)
    in_rows = (TOH - 1) * stride + (K - 1) * dilation + 1
    row_step = TOH * stride
    row0 = t * row_step
    if row_step > 0 and (row_step & (row_step - 1)) == 0:   # pow-2 alignment hint
        row0 = pl.multiple_of(row0, row_step)

    # padded-input rows needed for this output-row tile
    x_win = x_ref[0, :, pl.ds(row0, in_rows), :]             # (C_in, in_rows, W_pad)

    # im2col: tap (kh, kw, ci) -> contraction row (kh*K + kw)*C_in + ci,
    # built from plain slices of the planar NCHW window (no lane concat).
    taps = []
    for kh in range(K):
        h0 = kh * dilation
        for kw in range(K):
            w0 = kw * dilation
            taps.append(
                x_win[:, h0:h0 + (TOH - 1) * stride + 1:stride,
                         w0:w0 + (OW - 1) * stride + 1:stride])  # (C_in, TOH, OW)
    slab = jnp.concatenate(taps, axis=0)                     # (K*K*C_in, TOH, OW)
    slab = slab.reshape(K * K * C_in, TOH * OW)              # spatial -> lanes

    # single fused MXU dot; result is natively NCHW-major and lane-dense
    acc = jnp.dot(w_ref[0], slab,
                  preferred_element_type=jnp.float32)        # (C_out, TOH*OW) f32
    acc = acc + b_ref[0]                                     # (C_out, 1) broadcast
    o_ref[0] = acc.astype(o_ref.dtype)


def ebconv2d_forward(x, weight, bias, fc_w, fc_b, alpha2, *,
                     stride=1, padding=0, dilation=1, groups=1,
                     compute_dtype=jnp.bfloat16):
    """x: (B, C, H, W) float32 (NCHW). Returns NCHW. Non-binary, no-SE path."""
    assert groups == 1  # TODO(synk): grouped conv (groups > 1) not implemented
    E, C_out, C_in_g, K, _ = weight.shape
    B, C, H, W = x.shape
    assert C == C_in_g * groups

    # Gating: in the non-binary path PyTorch overwrites sigmoid(fc(avg_x)) with
    # a constant one-hot on expert 0, so the fc/sigmoid are dead and the expert
    # mixing collapses to selecting expert 0 (same weight/bias for every batch).
    OH = (H + 2 * padding - dilation * (K - 1) - 1) // stride + 1
    OW = (W + 2 * padding - dilation * (K - 1) - 1) // stride + 1
    H_pad, W_pad = H + 2 * padding, W + 2 * padding
    KKC = K * K * C_in_g

    # --- shared (batch-invariant) weight / bias with alpha2 folded in --------
    alpha = alpha2.reshape(C_out)
    w0 = weight[0] * alpha[:, None, None, None]              # (C_out, C_in, K, K)
    b0 = bias[0] * alpha                                     # (C_out,)
    # (C_out, C_in, Kh, Kw) -> (C_out, Kh, Kw, C_in) -> (C_out, K*K*C_in)
    w_taps = jnp.transpose(w0, (0, 2, 3, 1)).reshape(1, C_out, KKC)
    w_taps = w_taps.astype(compute_dtype)
    b_col = b0.reshape(1, C_out, 1).astype(jnp.float32)

    # --- input layout: stays planar NCHW (no NHWC transpose); pad only -------
    # TODO(synk): fold the zero-pad into the kernel (edge-tap masking) to kill
    # this extra HBM pass at very large spatial sizes.
    x_pad = jnp.pad(x.astype(compute_dtype),
                    ((0, 0), (0, 0), (padding, padding), (padding, padding)))

    # --- output-row tile: largest divisor of OH fitting the scratch budget ---
    itemsize_c = jnp.dtype(compute_dtype).itemsize
    itemsize_o = jnp.dtype(x.dtype).itemsize

    def _tile_ok(toh):
        m = toh * OW
        lane_ok = (toh == OH) or (m % 128 == 0)      # unmasked vst / valid block
        scratch = KKC * m * itemsize_c * 3 + C_out * m * 4 * 2
        return lane_ok and scratch <= (8 << 20)

    TOH = OH
    for cand in range(OH, 0, -1):
        if OH % cand == 0 and _tile_ok(cand):
            TOH = cand
            break
    NT = OH // TOH
    # TODO(synk): for images whose full padded plane exceeds the VMEM budget,
    # switch the x feed to a manually double-buffered halo-window DMA
    # (memory_space=pl.ANY + pltpu.make_async_copy) instead of a full-image block.

    # --- VMEM budget (v7x: 64 MiB physical / ~32 MiB scoped default) ---------
    x_blk = C_in_g * H_pad * W_pad * itemsize_c
    w_blk = C_out * KKC * itemsize_c + C_out * 4
    o_blk = C_out * TOH * OW * itemsize_o
    slab_b = KKC * TOH * OW * itemsize_c
    needed = 2 * (x_blk + w_blk + o_blk) + 4 * slab_b + (2 << 20)
    vmem_limit = int(min(max(needed, 32 << 20), 56 << 20))

    kernel = functools.partial(
        _ebconv_kernel, K=K, stride=stride, dilation=dilation,
        TOH=TOH, OW=OW, C_in=C_in_g, C_out=C_out)

    out_flat = pl.pallas_call(
        kernel,
        out_shape=jax.ShapeDtypeStruct((B, C_out, OH * OW), x.dtype),
        grid_spec=pltpu.PrefetchScalarGridSpec(
            num_scalar_prefetch=0,
            grid=(B, NT),
            in_specs=[
                pl.BlockSpec((1, C_in_g, H_pad, W_pad), lambda b, t: (b, 0, 0, 0)),
                pl.BlockSpec((1, C_out, KKC), lambda b, t: (0, 0, 0)),   # shared
                pl.BlockSpec((1, C_out, 1), lambda b, t: (0, 0, 0)),     # shared
            ],
            out_specs=pl.BlockSpec((1, C_out, TOH * OW), lambda b, t: (b, 0, t)),
        ),
        compiler_params=pltpu.CompilerParams(
            dimension_semantics=("parallel", "parallel"),
            vmem_limit_bytes=vmem_limit),
    )(x_pad, w_taps, b_col)

    # already NCHW-major; only a free reshape (no transpose / extra HBM pass)
    return out_flat.reshape(B, C_out, OH, OW)


def _reference(x, weight, bias, fc_w, fc_b, alpha2, *, stride, padding, dilation):
    """Pure-JAX reference mirroring the PyTorch forward (non-binary path)."""
    avg_x = jnp.mean(x, axis=(2, 3))
    gate = jax.nn.sigmoid(avg_x @ fc_w.T + fc_b)
    gate = jnp.zeros_like(gate).at[:, 0].set(1.0)
    w_mixed = jnp.einsum('be,eoihw->boihw', gate, weight)    # (B, O, I, K, K)
    b_mixed = gate @ bias                                    # (B, O)

    def conv_one(xb, wb):
        return jax.lax.conv_general_dilated(
            xb[None], wb, (stride, stride),
            [(padding, padding), (padding, padding)],
            rhs_dilation=(dilation, dilation),
            dimension_numbers=('NCHW', 'OIHW', 'NCHW'))[0]

    out = jax.vmap(conv_one)(x, w_mixed) + b_mixed[:, :, None, None]
    return out * alpha2


if __name__ == "__main__":
    B, C_in, H, W = 2, 4, 16, 16
    C_out, K = 8, 3
    stride, padding, dilation = 1, 1, 1
    num_experts = 4

    key = jax.random.PRNGKey(0)
    k_x, k_w, k_b, k_fw, k_fb = jax.random.split(key, 5)

    x = jax.random.normal(k_x, (B, C_in, H, W), jnp.float32)
    weight = jax.random.normal(k_w, (num_experts, C_out, C_in, K, K), jnp.float32) * 0.1
    bias = jax.random.normal(k_b, (num_experts, C_out), jnp.float32) * 0.1
    fc_w = jax.random.normal(k_fw, (num_experts, C_in), jnp.float32) * 0.1
    fc_b = jax.random.normal(k_fb, (num_experts,), jnp.float32) * 0.1
    alpha2 = jnp.ones((1, C_out, 1, 1), jnp.float32)  # PyTorch init: torch.ones

    fwd_bf16 = jax.jit(functools.partial(
        ebconv2d_forward, stride=stride, padding=padding, dilation=dilation,
        groups=1, compute_dtype=jnp.bfloat16))
    fwd_f32 = jax.jit(functools.partial(
        ebconv2d_forward, stride=stride, padding=padding, dilation=dilation,
        groups=1, compute_dtype=jnp.float32))

    out = jax.block_until_ready(fwd_bf16(x, weight, bias, fc_w, fc_b, alpha2))
    out_f32 = jax.block_until_ready(fwd_f32(x, weight, bias, fc_w, fc_b, alpha2))

    ref = _reference(x, weight, bias, fc_w, fc_b, alpha2,
                     stride=stride, padding=padding, dilation=dilation)

    assert out.shape == (B, C_out, H, W), out.shape
    # exact-algorithm check (f32 compute path), tight tolerance
    assert jnp.allclose(out_f32, ref, atol=1e-4, rtol=1e-4), \
        float(jnp.max(jnp.abs(out_f32 - ref)))
    # optimized bf16-MXU path, bf16-rounding tolerance
    assert jnp.allclose(out, ref, atol=5e-2, rtol=5e-2), \
        float(jnp.max(jnp.abs(out - ref)))

    print("KERNEL_OK")
</pallas_src>

<mosaic_0001>
module attributes {stable_mosaic.version = 11 : i64} {
  func.func @_ebconv_kernel(%arg0: i32, %arg1: i32, %arg2: memref<1x4x18x18xbf16, #tpu.memory_space<vmem>>, %arg3: memref<1x8x36xbf16, #tpu.memory_space<vmem>>, %arg4: memref<1x8x1xf32, #tpu.memory_space<vmem>>, %arg5: memref<1x8x256xf32, #tpu.memory_space<vmem>>) attributes {dimension_semantics = [#tpu.dimension_semantics<parallel>, #tpu.dimension_semantics<parallel>], iteration_bounds = array<i64: 2, 1>, scalar_prefetch = 0 : i64, scratch_operands = 0 : i64, tpu.core_type = #tpu.core_type<tc>, window_params = [{transform_indices = @transform_0, window_bounds = array<i64: 1, 4, 18, 18>}, {pipeline_mode = #tpu.pipeline_mode<synchronous>, transform_indices = @transform_1, window_bounds = array<i64: 1, 8, 36>}, {pipeline_mode = #tpu.pipeline_mode<synchronous>, transform_indices = @transform_2, window_bounds = array<i64: 1, 8, 1>}, {transform_indices = @transform_3, window_bounds = array<i64: 1, 8, 256>}]} {
    %c16_i32 = arith.constant 16 : i32
    %0 = arith.muli %arg1, %c16_i32 : i32
    %1 = tpu.assume_multiple %0, 16 : i32
    %c0 = arith.constant 0 : index
    %c0_0 = arith.constant 0 : index
    %2 = arith.index_cast %1 : i32 to index
    %c0_1 = arith.constant 0 : index
    %3 = vector.load %arg2[%c0, %c0_0, %2, %c0_1] : memref<1x4x18x18xbf16, #tpu.memory_space<vmem>>, vector<1x4x18x18xbf16>
    %4 = vector.shape_cast %3 : vector<1x4x18x18xbf16> to vector<4x18x18xbf16>
    %5 = vector.extract_strided_slice %4 {offsets = [0, 0, 0], sizes = [4, 16, 16], strides = [1, 1, 1]} : vector<4x18x18xbf16> to vector<4x16x16xbf16>
    %6 = vector.extract_strided_slice %4 {offsets = [0, 0, 1], sizes = [4, 16, 16], strides = [1, 1, 1]} : vector<4x18x18xbf16> to vector<4x16x16xbf16>
    %7 = vector.extract_strided_slice %4 {offsets = [0, 0, 2], sizes = [4, 16, 16], strides = [1, 1, 1]} : vector<4x18x18xbf16> to vector<4x16x16xbf16>
    %8 = vector.extract_strided_slice %4 {offsets = [0, 1, 0], sizes = [4, 16, 16], strides = [1, 1, 1]} : vector<4x18x18xbf16> to vector<4x16x16xbf16>
    %9 = vector.extract_strided_slice %4 {offsets = [0, 1, 1], sizes = [4, 16, 16], strides = [1, 1, 1]} : vector<4x18x18xbf16> to vector<4x16x16xbf16>
    %10 = vector.extract_strided_slice %4 {offsets = [0, 1, 2], sizes = [4, 16, 16], strides = [1, 1, 1]} : vector<4x18x18xbf16> to vector<4x16x16xbf16>
    %11 = vector.extract_strided_slice %4 {offsets = [0, 2, 0], sizes = [4, 16, 16], strides = [1, 1, 1]} : vector<4x18x18xbf16> to vector<4x16x16xbf16>
    %12 = vector.extract_strided_slice %4 {offsets = [0, 2, 1], sizes = [4, 16, 16], strides = [1, 1, 1]} : vector<4x18x18xbf16> to vector<4x16x16xbf16>
    %13 = vector.extract_strided_slice %4 {offsets = [0, 2, 2], sizes = [4, 16, 16], strides = [1, 1, 1]} : vector<4x18x18xbf16> to vector<4x16x16xbf16>
    %14 = tpu.concatenate %5, %6, %7, %8, %9, %10, %11, %12, %13 in 0 : vector<4x16x16xbf16>, vector<4x16x16xbf16>, vector<4x16x16xbf16>, vector<4x16x16xbf16>, vector<4x16x16xbf16>, vector<4x16x16xbf16>, vector<4x16x16xbf16>, vector<4x16x16xbf16>, vector<4x16x16xbf16> -> vector<36x16x16xbf16>
    %15 = vector.shape_cast %14 : vector<36x16x16xbf16> to vector<36x256xbf16>
    %c0_2 = arith.constant 0 : index
    %c0_3 = arith.constant 0 : index
    %c0_4 = arith.constant 0 : index
    %16 = vector.load %arg3[%c0_2, %c0_3, %c0_4] : memref<1x8x36xbf16, #tpu.memory_space<vmem>>, vector<1x8x36xbf16>
    %17 = vector.shape_cast %16 : vector<1x8x36xbf16> to vector<8x36xbf16>
    %cst = arith.constant dense<0.000000e+00> : vector<8x256xf32>
    %18 = tpu.matmul %17, %15, %cst {dimension_numbers = #tpu.dot_dimension_numbers<[1], [0], [0], [1], [0, 0, 1, 1], [], []>} : vector<8x36xbf16>, vector<36x256xbf16>, vector<8x256xf32> -> vector<8x256xf32>
    %c0_5 = arith.constant 0 : index
    %c0_6 = arith.constant 0 : index
    %c0_7 = arith.constant 0 : index
    %19 = vector.load %arg4[%c0_5, %c0_6, %c0_7] : memref<1x8x1xf32, #tpu.memory_space<vmem>>, vector<1x8x1xf32>
    %20 = vector.shape_cast %19 : vector<1x8x1xf32> to vector<8x1xf32>
    %21 = vector.broadcast %20 : vector<8x1xf32> to vector<8x256xf32>
    %22 = arith.addf %18, %21 : vector<8x256xf32>
    %c0_8 = arith.constant 0 : index
    %c0_9 = arith.constant 0 : index
    %c0_10 = arith.constant 0 : index
    %23 = vector.load %arg5[%c0_8, %c0_9, %c0_10] : memref<1x8x256xf32, #tpu.memory_space<vmem>>, vector<1x8x256xf32>
    %24 = vector.shape_cast %23 : vector<1x8x256xf32> to vector<8x256xf32>
    %25 = vector.shape_cast %22 : vector<8x256xf32> to vector<1x8x256xf32>
    tpu.vector_store %arg5[%c0_8, %c0_9, %c0_10], %25 {strides = array<i32>} : memref<1x8x256xf32, #tpu.memory_space<vmem>>, vector<1x8x256xf32>,
    return
  }
  func.func @transform_0(%arg0: i32, %arg1: i32) -> (i32, i32, i32, i32) {
    %c0_i32 = arith.constant 0 : i32
    %c0_i32_0 = arith.constant 0 : i32
    %c0_i32_1 = arith.constant 0 : i32
    %c0_i32_2 = arith.constant 0 : i32
    return %arg0, %c0_i32, %c0_i32_0, %c0_i32_1 : i32, i32, i32, i32
  }
  func.func @transform_1(%arg0: i32, %arg1: i32) -> (i32, i32, i32) {
    %c0_i32 = arith.constant 0 : i32
    %c0_i32_0 = arith.constant 0 : i32
    %c0_i32_1 = arith.constant 0 : i32
    %c0_i32_2 = arith.constant 0 : i32
    return %c0_i32, %c0_i32_0, %c0_i32_1 : i32, i32, i32
  }
  func.func @transform_2(%arg0: i32, %arg1: i32) -> (i32, i32, i32) {
    %c0_i32 = arith.constant 0 : i32
    %c0_i32_0 = arith.constant 0 : i32
    %c0_i32_1 = arith.constant 0 : i32
    %c0_i32_2 = arith.constant 0 : i32
    return %c0_i32, %c0_i32_0, %c0_i32_1 : i32, i32, i32
  }
  func.func @transform_3(%arg0: i32, %arg1: i32) -> (i32, i32, i32) {
    %c0_i32 = arith.constant 0 : i32
    %c0_i32_0 = arith.constant 0 : i32
    return %arg0, %c0_i32, %arg1 : i32, i32, i32
  }
}

</mosaic_0001>

<bundles_post_ra>
// kernel: mul.11
= control target key start
LH: loop header
LB: loop body
LE: loop exit
PB: predicated region body
PF: predicated region fallthrough
CT: control target
= control target key end

     0   :  { %s34_s0 = inlined_call_operand.vmem [shape: f32[1,8,1], index: 0, kind: input, shape index: {}]   ;;  %s35_s1 = inlined_call_operand.vmem [shape: f32[1,8,1], index: 1, kind: input, shape index: {}]   ;;  %s36_s2 = inlined_call_operand.vmem [shape: f32[1,8,1], index: 2, kind: output, shape index: {}]  }
   0x1   :  { %v3_v0 = vld [vmem:[%s34_s0] sm:$0xff] }
   0x2   :  { %v4_v1 = vld [vmem:[%s35_s1] sm:$0xff] }
   0x3   :  { %v7_v2 = vmul.f32 %v4_v1, %v3_v0 }
   0x5   :  { %9 = vst [vmem:[%s36_s2] sm:$0xff] %v7_v2 }

// kernel: ebconv2d_forward.1
= control target key start
LH: loop header
LB: loop body
LE: loop exit
PB: predicated region body
PF: predicated region fallthrough
CT: control target
= control target key end

     0   :  { %s2112_s12 = smov 0   ;;  %s2114_s13 = smov 0   ;;  %s2980_s0 = inlined_call_operand.vmem [shape: bf16[2,4,18,18], index: 0, kind: input, shape index: {}]   ;;  %s2981_s1 = inlined_call_operand.vmem [shape: bf16[1,8,36], index: 1, kind: input, shape index: {}]   ;;  %s2982_s2 = inlined_call_operand.vmem [shape: f32[1,8,1], index: 2, kind: input, shape index: {}]   ;;  %s2983_s3 = inlined_call_operand.vmem [shape: f32[2,8,256], index: 3, kind: output, shape index: {}]  }
   0x1   :  { %s2116_s14 = smov 0  }
   0x2 LB: > { %s25_s15 = sadd.s32 1, %s2074_s13  ;;  %p1933_p0 = scmp.ge.s32.totalorder %s2078_s14, 1  ;;  %s2078_s14 = sphi %s2116_s14, %s13_s14   ;;  %s2074_s13 = sphi %s2114_s13, %s3006_s13   ;;  %s2070_s12 = sphi %s2112_s12, %s3005_s12  }
   0x3   : > { %p27_p1 = scmp.ge.s32.totalorder %s25_s15, 2  ;;  %p151_p2 = scmp.lt.s32.totalorder %s2078_s14, 3 }
   0x5   : > { %s3008_s15 = smov (%p27_p1, %s25_s15), 0  ;;  %p152_p3 = pnand %p1933_p0, %p151_p2 }
   0x7   : > { %155 = sbr.rel (%p152_p3) target bundleno = 620 (0x26c), region = 32 }
   0xe   : > { %p179_p4 = scmp.lt.s32.totalorder %s2070_s12, 1  ;;  %s2080_s20 = smov 127   ;;  %vm252_vm0 = vsmask.f32 3328  ;;  %vm253_vm1 = vsmask.f32 7440 }
   0xf   : > { %s2081_s21 = smov 126   ;;  %vm2242_vm2 = vmor %vm252_vm0, %vm253_vm1  ;;  %vm387_vm3 = vcmask 1042432   ;;  %vm388_vm4 = vcmask 1046532   ;;  %s2084_s22 = smov 32   ;;  %vm1686_vm6 = vcmask 130048   ;;  %vm1696_vm7 = vcmask 261120  }
  0x10   : > { %s3010_s12 = smov (!%p179_p4, %s2070_s12), 1  ;;  %vm2359_vm5 = vmor %vm387_vm3, %vm388_vm4  ;;  %s2085_s23 = smov 64   ;;  %vm1703_vm8 = vcmask 392192   ;;  %vm1710_vm9 = vcmask 523264   ;;  %vm1717_vm10 = vcmask 654336   ;;  %vm1724_vm11 = vcmask 785408  }
  0x11   : > { %s2018_s16 = smul.u32 48, %s3010_s12  ;;  %s2086_s24 = smov 16   ;;  %vm1731_vm12 = vcmask 916480   ;;  %vm1798_vm13 = vcmask 1041408   ;;  %vm1794_vm14 = vcmask 293888  }
  0x12   : > { %s2087_s25 = smov 48   ;;  %s2088_s26 = smov 96  }
  0x13   : > { %s2136_s19 = scalar_lea.vmem %s2980_s0, %s2018_s16  ;;  %s2089_s27 = smov 80  }
  0x14   : > { %v2139_v0 = vld [vmem:[%s2136_s19 + $0x1c] sm:$0xf]  ;;  %v2142_v1 = vld [vmem:[%s2136_s19 + $0x4] sm:$0xf]  ;;  %v2145_v2 = vld [vmem:[%s2136_s19 + $0x28] sm:$0xf] }
  0x15   : > { %230 = vrot.lane.b32.xlu1 %v2139_v0, %s2080_s20  ;;  %222 = vrot.lane.b32.xlu0 %v2142_v1, %s2080_s20  ;;  %v2152_v3 = vld [vmem:[%s2136_s19 + $0x10] sm:$0xf]  ;;  %v586_v4 = vpack.i.b16 %v2145_v2, %v2139_v0  ;;  %v265_v6 = vshll.u32 %v2142_v1, 16  ;;  %v269_v7 = vshrl.u32 %v2142_v1, 16  ;;  %v2167_v10 = vld [vmem:[%s2136_s19 + $0x14] sm:$0x1] }
  0x16   : > { %v582_v5 = vpack.i.b16 %v2152_v3, %v2142_v1  ;;  %v289_v8 = vshll.u32 %v2152_v3, 16  ;;  %v293_v9 = vshrl.u32 %v2152_v3, 16  ;;  %v337_v11 = vshll.u32 %v2145_v2, 16  ;;  %v2176_v13 = vld [vmem:[%s2136_s19 + $0x8] sm:$0x1]  ;;  %s2090_s28 = smov 112  }
  0x17   : > { %v341_v12 = vshrl.u32 %v2145_v2, 16  ;;  %v2178_v14 = vrot.slane %v265_v6, 5  ;;  %v271_v15 = vrot.slane %v269_v7, 4  ;;  %v313_v16 = vshll.u32 %v2139_v0, 16  ;;  %v2189_v20 = vld [vmem:[%s2136_s19 + $0x2c] sm:$0x1] }
  0x18   : > { %v317_v17 = vshrl.u32 %v2139_v0, 16  ;;  %v2184_v18 = vrot.slane %v289_v8, 5  ;;  %v295_v19 = vrot.slane %v293_v9, 4  ;;  %v2192_v21 = vld [vmem:[%s2136_s19 + $0x20] sm:$0x1]  ;;  %v299_v22 = vshll.u32 %v2167_v10, 16 }
  0x19   : > { %234 = vrot.lane.b32.xlu1 %v2145_v2, %s2080_s20  ;;  %226 = vrot.lane.b32.xlu0 %v2152_v3, %s2080_s20  ;;  %v275_v23 = vshll.u32 %v2176_v13, 16  ;;  %v2196_v24 = vrot.slane %v337_v11, 5  ;;  %v343_v25 = vrot.slane %v341_v12, 4  ;;  %v272_v26 = vor.u32 %v271_v15, %v2178_v14  ;;  %v2211_v30 = vld [vmem:[%s2136_s19 + $0xc] sm:$0xf]  ;;  %s1993_s6 = sshll.u32 %s3010_s12, 4 }
  0x1a   : > { %v347_v27 = vshll.u32 %v2189_v20, 16  ;;  %v2206_v28 = vrot.slane %v313_v16, 5  ;;  %v319_v29 = vrot.slane %v317_v17, 4  ;;  %v2214_v31 = vld [vmem:[%s2136_s19] sm:$0xf]  ;;  %v296_v32 = vor.u32 %v295_v19, %v2184_v18  ;;  %s192_s9 = scalar_lea.vmem %s2983_s3, %s1993_s6 }
  0x1b   : > { %v323_v33 = vshll.u32 %v2192_v21, 16  ;;  %v280_v34 = vshrl.u32 %v2211_v30, 16  ;;  %v301_v35 = vrot.slane %v299_v22, 5  ;;  %v344_v36 = vor.u32 %v343_v25, %v2196_v24  ;;  %v2227_v39 = vld [vmem:[%s2136_s19 + $0x24] sm:$0xf] }
  0x1c   : > { %v283_v37 = vshll.u32 %v2211_v30, 16  ;;  %v256_v38 = vshrl.u32 %v2214_v31, 16  ;;  %v273_v40 = vrot.slane %v272_v26, 4  ;;  %v277_v41 = vrot.slane %v275_v23, 5  ;;  %v2231_v44 = vld [vmem:[%s2136_s19 + $0x18] sm:$0xf] }
  0x1d   : > { %242 = vrot.lane.b32.xlu1 %v2152_v3, %s2081_s21  ;;  %238 = vrot.lane.b32.xlu0 %v2142_v1, %s2081_s21  ;;  %v349_v42 = vrot.slane %v347_v27, 5  ;;  %v320_v43 = vor.u32 %v319_v29, %v2206_v28  ;;  %v297_v45 = vrot.slane %v296_v32, 4  ;;  %v325_v46 = vrot.slane %v323_v33, 5 }
  0x1e   : > { %v282_v47 = vrot.slane %v280_v34, 4  ;;  %v285_v48 = vrot.slane %v283_v37, 5  ;;  %v258_v49 = vrot.slane %v256_v38, 4  ;;  %v259_v50 = vshll.u32 %v2214_v31, 16 }
  0x1f   : > { %v328_v51 = vshrl.u32 %v2227_v39, 16  ;;  %v331_v52 = vshll.u32 %v2227_v39, 16  ;;  %v345_v54 = vrot.slane %v344_v36, 4  ;;  %v304_v56 = vshrl.u32 %v2231_v44, 16 }
  0x20   : > { %v286_v55 = vor.u32 %v285_v48, %v282_v47  ;;  %v307_v57 = vshll.u32 %v2231_v44, 16  ;;  %v321_v58 = vrot.slane %v320_v43, 4  ;;  %v261_v59 = vrot.slane %v259_v50, 5 }
  0x21   : > { %250 = vrot.lane.b32.xlu1 %v2145_v2, %s2081_s21  ;;  %246 = vrot.lane.b32.xlu0 %v2139_v0, %s2081_s21  ;;  %v330_v60 = vrot.slane %v328_v51, 4  ;;  %v333_v61 = vrot.slane %v331_v52, 5  ;;  %v306_v63 = vrot.slane %v304_v56, 4  ;;  %v2254_v8 = vsel %vm2242_vm2, %v297_v45, %v301_v35 }
  0x22   : > { %v287_v62 = vrot.slane %v286_v55, 4  ;;  %v309_v6 = vrot.slane %v307_v57, 5  ;;  %v2258_v11 = vsel %vm2242_vm2, %v273_v40, %v277_v41  ;;  %v262_v15 = vor.u32 %v261_v59, %v258_v49 }
  0x23   : > { %v334_v16 = vor.u32 %v333_v61, %v330_v60  ;;  %v627_v19 = vshrl.u32 %v2254_v8, 16  ;;  %v626_v22 = vshrl.u32 %v2258_v11, 16  ;;  %v2264_v23 = vsel %vm2242_vm2, %v345_v54, %v349_v42 }
  0x24   : > { %v310_v25 = vor.u32 %v309_v6, %v306_v63  ;;  %v635_v26 = vshrl.u32 %v2264_v23, 16  ;;  %v2273_v27 = vsel %vm2242_vm2, %v321_v58, %v325_v46  ;;  %v263_v29 = vrot.slane %v262_v15, 4 }
  0x25   : > { %224 = vrot.lane.b32.xlu1 %v2211_v30, %s2080_s20  ;;  %220 = vrot.lane.b32.xlu0 %v2214_v31, %s2080_s20  ;;  %v335_v32 = vrot.slane %v334_v16, 4  ;;  %v634_v33 = vshrl.u32 %v2273_v27, 16  ;;  %v2279_v35 = vsel %vm2242_vm2, %v287_v62, %v2184_v18  ;;  %v2285_v37 = vpack.i.b16 %v341_v12, %v317_v17 }
  0x26   : > { %v311_v36 = vrot.slane %v310_v25, 4  ;;  %v495_v40 = vshrl.u32 %v2279_v35, 16  ;;  %v2291_v41 = vsel %vm2242_vm2, %v263_v29, %v2178_v14  ;;  %v2302_v18 = vpack.i.b16 %v293_v9, %v269_v7 }
  0x27   : > { %v2296_v42 = vsel %vm2242_vm2, %v335_v32, %v2196_v24  ;;  %v494_v12 = vshrl.u32 %v2291_v41, 16  ;;  %v624_v7 = vpack.i.b16 %v2254_v8, %v2258_v11  ;;  %v2318_v9 = vpack.i.b16 %v627_v19, %v626_v22 }
  0x28   : > { %v503_v17 = vshrl.u32 %v2296_v42, 16  ;;  %v2309_v14 = vsel %vm2242_vm2, %v311_v36, %v2206_v28  ;;  %v632_v43 = vpack.i.b16 %v2264_v23, %v2273_v27  ;;  %v2322_v45 = vpack.i.b16 %v635_v26, %v634_v33 }
  0x29   : > { %232 = vrot.lane.b32.xlu1 %v2227_v39, %s2080_s20  ;;  %228 = vrot.lane.b32.xlu0 %v2231_v44, %s2080_s20  ;;  %v502_v24 = vshrl.u32 %v2309_v14, 16  ;;  %v450_v28 = vpack.i.b16 %v2211_v30, %v2214_v31  ;;  %v2330_v46 = vpack.i.b16 %v280_v34, %v256_v38  ;;  %v454_v47 = vpack.i.b16 %v2227_v39, %v2231_v44 }
  0x2a   : > { %v2334_v48 = vpack.i.b16 %v328_v51, %v304_v56  ;;  %v492_v49 = vpack.i.b16 %v2279_v35, %v2291_v41  ;;  %v2338_v50 = vpack.i.b16 %v495_v40, %v494_v12  ;;  %v500_v52 = vpack.i.b16 %v2296_v42, %v2309_v14 }
  0x2b   : > { %v2342_v53 = vpack.i.b16 %v503_v17, %v502_v24  ;;  %v399_v34 = vrot.slane %v2152_v3, 5  ;;  %v392_v38 = vrot.slane %v2142_v1, 5  ;;  %v402_v54 = vrot.slane %v2167_v10, 5 }
  0x2c   : > { %v395_v57 = vrot.slane %v2176_v13, 5  ;;  %v413_v58 = vrot.slane %v2145_v2, 5  ;;  %v406_v59 = vrot.slane %v2139_v0, 5  ;;  %v416_v60 = vrot.slane %v2189_v20, 5 }
  0x2d   : > { %240 = vrot.lane.b32.xlu1 %v2211_v30, %s2081_s21  ;;  %236 = vrot.lane.b32.xlu0 %v2214_v31, %s2081_s21  ;;  %v401_v51 = vrot.slane %v399_v34, 4  ;;  %v394_v56 = vrot.slane %v392_v38, 4  ;;  %v409_v63 = vrot.slane %v2192_v21, 5  ;;  %v1938_v21 = vrot.slane %v2211_v30, 9 }
  0x2e   : > { %v415_v13 = vrot.slane %v413_v58, 4  ;;  %v408_v62 = vrot.slane %v406_v59, 4  ;;  %v1937_v15 = vrot.slane %v2214_v31, 9  ;;  %v1940_v32 = vrot.slane %v2227_v39, 9 }
  0x2f   : > { %v2372_v10 = vsel %vm2359_vm5, %v401_v51, %v402_v54  ;;  %v2377_v61 = vsel %vm2359_vm5, %v394_v56, %v395_v57  ;;  %v2404_v16 = vsel %vm2359_vm5, %v1938_v21, %v399_v34  ;;  %v1939_v33 = vrot.slane %v2231_v44, 9 }
  0x30   : > { %v2386_v6 = vsel %vm2359_vm5, %v415_v13, %v416_v60  ;;  %v2390_v20 = vsel %vm2359_vm5, %v408_v62, %v409_v63  ;;  %v2408_v19 = vsel %vm2359_vm5, %v1937_v15, %v392_v38  ;;  %v543_v22 = vshrl.u32 %v2404_v16, 16 }
  0x31   : > { %248 = vrot.lane.b32.xlu1 %v2227_v39, %s2081_s21  ;;  %244 = vrot.lane.b32.xlu0 %v2231_v44, %s2081_s21  ;;  %v542_v25 = vshrl.u32 %v2408_v19, 16  ;;  %v2436_v36 = vsel %vm2359_vm5, %v1940_v32, %v413_v58  ;;  %v2440_v40 = vsel %vm2359_vm5, %v1939_v33, %v406_v59  ;;  %v2082_v12 = vmov 1983009808  }
  0x32   : > { %v716_v17 = vunpack.c.l.s4 %v2082_v12  ;;  %v718_v24 = vlaneseq  ;;  %v2083_v12 = vmov 1934713408  }
  0x33   : > { %v2418_v29 = vpack.i.b16 %v543_v22, %v542_v25 }
  0x34   : > { %v717_v51 = vunpack.c.0.s8 %v716_v17  ;;  %v719_v54 = vshrl.u32 %v718_v24, 7  ;;  %v733_v17 = vunpack.c.l.s4 %v2083_v12 }
  0x35   : > { %357 = vrot.lane.b32.xlu1 %v2254_v8, %s2080_s20  ;;  %353 = vrot.lane.b32.xlu0 %v2258_v11, %s2080_s20 }
  0x36   : > { %v2462_v57 = vsub.s32 %v717_v51, %v719_v54 }
  0x39   : > { %365 = vrot.lane.b32.xlu1 %v2264_v23, %s2080_s20  ;;  %361 = vrot.lane.b32.xlu0 %v2273_v27, %s2080_s20 }
  0x3d   : > { %373 = vrot.lane.b32.xlu1 %v2254_v8, %s2081_s21  ;;  %369 = vrot.lane.b32.xlu0 %v2258_v11, %s2081_s21 }
  0x41   : > { %381 = vrot.lane.b32.xlu1 %v2264_v23, %s2081_s21  ;;  %377 = vrot.lane.b32.xlu0 %v2273_v27, %s2081_s21 }
  0x45   : > { %424 = vrot.lane.b32.xlu1 %v2372_v10, %s2080_s20  ;;  %420 = vrot.lane.b32.xlu0 %v2377_v61, %s2080_s20 }
  0x49   : > { %432 = vrot.lane.b32.xlu1 %v2386_v6, %s2080_s20  ;;  %428 = vrot.lane.b32.xlu0 %v2390_v20, %s2080_s20 }
  0x4d   : > { %355 = vrot.lane.b32.xlu1 %v2279_v35, %s2080_s20  ;;  %351 = vrot.lane.b32.xlu0 %v2291_v41, %s2080_s20 }
  0x51   : > { %363 = vrot.lane.b32.xlu1 %v2296_v42, %s2080_s20  ;;  %359 = vrot.lane.b32.xlu0 %v2309_v14, %s2080_s20 }
  0x55   : > { %371 = vrot.lane.b32.xlu1 %v2279_v35, %s2081_s21  ;;  %367 = vrot.lane.b32.xlu0 %v2291_v41, %s2081_s21 }
  0x59   : > { %379 = vrot.lane.b32.xlu1 %v2296_v42, %s2081_s21  ;;  %375 = vrot.lane.b32.xlu0 %v2309_v14, %s2081_s21 }
  0x5d   : > { %422 = vrot.lane.b32.xlu1 %v2404_v16, %s2080_s20  ;;  %418 = vrot.lane.b32.xlu0 %v2408_v19, %s2080_s20 }
  0x61   : > { %430 = vrot.lane.b32.xlu1 %v2436_v36, %s2080_s20  ;;  %426 = vrot.lane.b32.xlu0 %v2440_v40, %s2080_s20 }
  0x65   : > { %436 = vrot.lane.b32.xlu1 %v2377_v61, %s2081_s21  ;;  %434 = vrot.lane.b32.xlu0 %v2408_v19, %s2081_s21 }
  0x69   : > { %440 = vrot.lane.b32.xlu1 %v2372_v10, %s2081_s21  ;;  %438 = vrot.lane.b32.xlu0 %v2404_v16, %s2081_s21 }
  0x6d   : > { %444 = vrot.lane.b32.xlu1 %v2390_v20, %s2081_s21  ;;  %442 = vrot.lane.b32.xlu0 %v2440_v40, %s2081_s21 }
  0x71   : > { %448 = vrot.lane.b32.xlu1 %v2386_v6, %s2081_s21  ;;  %446 = vrot.lane.b32.xlu0 %v2436_v36, %s2081_s21 }
  0x87   : > { %v231_v34 = vpop.permute.xlu1 %230  ;;  %v223_v38 = vpop.permute.xlu0 %222 }
  0x88   : > { %v602_v55 = vshrl.u32 %v231_v34, 16  ;;  %v594_v56 = vshrl.u32 %v223_v38, 16 }
  0x8b   : > { %v235_v58 = vpop.permute.xlu1 %234  ;;  %v227_v59 = vpop.permute.xlu0 %226 }
  0x8c   : > { %v600_v60 = vpack.i.b16 %v235_v58, %v231_v34  ;;  %v603_v13 = vshrl.u32 %v235_v58, 16  ;;  %v592_v62 = vpack.i.b16 %v227_v59, %v223_v38  ;;  %v595_v63 = vshrl.u32 %v227_v59, 16 }
  0x8e   : > { %v604_v21 = vpack.i.b16 %v603_v13, %v602_v55  ;;  %v1062_v15 = vcombine.low %v586_v4, %v600_v60  ;;  %v596_v22 = vpack.i.b16 %v595_v63, %v594_v56  ;;  %v1054_v25 = vcombine.low %v582_v5, %v592_v62 }
  0x8f   : > { %v243_v32 = vpop.permute.xlu1 %242  ;;  %v239_v33 = vpop.permute.xlu0 %238  ;;  %v734_v60 = vunpack.c.0.s8 %v733_v17 }
  0x90   : > { %v1069_v24 = vrot.slane %v1062_v15, %v2462_v57  ;;  %v1096_v34 = vcombine.low %v2285_v37, %v604_v21  ;;  %v1061_v38 = vrot.slane %v1054_v25, %v2462_v57  ;;  %v1088_v51 = vcombine.low %v2302_v18, %v596_v22 }
  0x91   : > { %v611_v55 = vshrl.u32 %v243_v32, 16  ;;  %v608_v0 = vpack.i.b16 %v243_v32, %v239_v33  ;;  %v610_v2 = vshrl.u32 %v239_v33, 16  ;;  %v2492_v32 = vsub.s32 %v734_v60, %v719_v54 }
  0x92   : > { %v2475_v4 = vrot.slane %v1096_v34, %v2462_v57  ;;  %v1070_v1 = vcombine.low %v1061_v38, %v1069_v24  ;;  %v1071_v3 = vcombine.high %v1061_v38, %v1069_v24  ;;  %v2478_v5 = vrot.slane %v1088_v51, %v2462_v57 }
  0x93   : > { %v612_v56 = vpack.i.b16 %v611_v55, %v610_v2  ;;  %v1122_v37 = vcombine.low %v608_v0, %v624_v7  ;;  %v251_v58 = vpop.permute.xlu1 %250  ;;  %v247_v59 = vpop.permute.xlu0 %246 }
  0x94   : > { %v619_v18 = vshrl.u32 %v251_v58, 16  ;;  %v616_v13 = vpack.i.b16 %v251_v58, %v247_v59  ;;  %v618_v62 = vshrl.u32 %v247_v59, 16  ;;  %v1104_v63 = vcombine.low %v2478_v5, %v2475_v4 }
  0x95   : > { %v1105_v22 = vcombine.high %v2478_v5, %v2475_v4  ;;  %v1129_v8 = vrot.slane %v1122_v37, %v2462_v57  ;;  %v1156_v11 = vcombine.low %v612_v56, %v2318_v9  ;;  %v2502_v0 = vrot.slane %v1070_v1, %v2492_v32 }
  0x96   : > { %v620_v21 = vpack.i.b16 %v619_v18, %v618_v62  ;;  %v1130_v15 = vcombine.low %v616_v13, %v632_v43  ;;  %v2505_v5 = vrot.slane %v1071_v3, %v2492_v32  ;;  %v1112_v31 = vrot.slane %v1104_v63, %v2492_v32 }
  0x97   : > { %v225_v7 = vpop.permute.xlu1 %224  ;;  %v221_v25 = vpop.permute.xlu0 %220  ;;  %v1163_v9 = vrot.slane %v1156_v11, %v2462_v57 }
  0x98   : > { %v1137_v33 = vrot.slane %v1130_v15, %v2462_v57  ;;  %v1164_v12 = vcombine.low %v620_v21, %v2322_v45  ;;  %v463_v17 = vshrl.u32 %v225_v7, 16  ;;  %v460_v24 = vpack.i.b16 %v225_v7, %v221_v25 }
  0x99   : > { %v462_v34 = vshrl.u32 %v221_v25, 16 }
  0x9a   : > { %v1138_v23 = vcombine.low %v1129_v8, %v1137_v33  ;;  %v1139_v27 = vcombine.high %v1129_v8, %v1137_v33  ;;  %v1171_v43 = vrot.slane %v1164_v12, %v2462_v57  ;;  %v714_v38 = vcombine.low %v450_v28, %v460_v24 }
  0x9b   : > { %v464_v51 = vpack.i.b16 %v463_v17, %v462_v34  ;;  %v233_v54 = vpop.permute.xlu1 %232  ;;  %v229_v55 = vpop.permute.xlu0 %228  ;;  %v2531_v12 = vrot.slane %v1105_v22, %v2492_v32 }
  0x9c   : > { %v471_v45 = vshrl.u32 %v233_v54, 16  ;;  %v468_v2 = vpack.i.b16 %v233_v54, %v229_v55  ;;  %v470_v4 = vshrl.u32 %v229_v55, 16  ;;  %v2508_v56 = vrot.slane %v1138_v23, %v2492_v32 }
  0x9d   : > { %v2511_v30 = vrot.slane %v1139_v27, %v2492_v32  ;;  %v1172_v28 = vcombine.low %v1163_v9, %v1171_v43  ;;  %v721_v37 = vrot.slane %v714_v38, %v2462_v57  ;;  %v1173_v59 = vcombine.high %v1163_v9, %v1171_v43 }
  0x9e   : > { %v472_v58 = vpack.i.b16 %v471_v45, %v470_v4  ;;  %v722_v1 = vcombine.low %v454_v47, %v468_v2  ;;  %v748_v3 = vcombine.low %v2330_v46, %v464_v51  ;;  %v2006_v13 = vcombine.high %v2502_v0, %v2508_v56 }
  0x9f   : > { %v241_v60 = vpop.permute.xlu1 %240  ;;  %v237_v18 = vpop.permute.xlu0 %236  ;;  %v1977_v62 = vcombine.low %v2505_v5, %v2511_v30  ;;  %v1180_v63 = vrot.slane %v1172_v28, %v2492_v32  ;;  %v2012_v11 = vcombine.high %v2505_v5, %v2511_v30  ;;  %v2535_v23 = vrot.slane %v1173_v59, %v2492_v32 }
  0xa0   : > { %v729_v21 = vrot.slane %v722_v1, %v2462_v57  ;;  %v756_v15 = vcombine.low %v2334_v48, %v472_v58  ;;  %v479_v8 = vshrl.u32 %v241_v60, 16  ;;  %v476_v39 = vpack.i.b16 %v241_v60, %v237_v18  ;;  %1585 = vrot.lane.b32.xlu0 %v2006_v13, %s2084_s22 }
  0xa1   : > { %v478_v44 = vshrl.u32 %v237_v18, 16  ;;  %v1968_v46 = vcombine.low %v1112_v31, %v1180_v63  ;;  %v2009_v47 = vcombine.high %v1112_v31, %v1180_v63  ;;  %v755_v48 = vrot.slane %v748_v3, %v2462_v57 }
  0xa2   : > { %v730_v7 = vcombine.low %v721_v37, %v729_v21  ;;  %v731_v25 = vcombine.high %v721_v37, %v729_v21  ;;  %v763_v33 = vrot.slane %v756_v15, %v2462_v57  ;;  %v782_v43 = vcombine.low %v476_v39, %v492_v49 }
  0xa3   : > { %v480_v17 = vpack.i.b16 %v479_v8, %v478_v44  ;;  %v249_v24 = vpop.permute.xlu1 %248  ;;  %v245_v34 = vpop.permute.xlu0 %244  ;;  %v1980_v45 = vcombine.low %v2531_v12, %v2535_v23  ;;  %v2015_v49 = vcombine.high %v2531_v12, %v2535_v23  ;;  %v2996_v23 = vpack.i.b16 %v2404_v16, %v2408_v19 }
  0xa4   : > { %v487_v38 = vshrl.u32 %v249_v24, 16  ;;  %v484_v9 = vpack.i.b16 %v249_v24, %v245_v34  ;;  %v486_v51 = vshrl.u32 %v245_v34, 16  ;;  %1623 = vrot.lane.b32.xlu0 %v1977_v62, %s2085_s23  ;;  %v764_v22 = vcombine.low %v755_v48, %v763_v33 }
  0xa5   : > { %v765_v2 = vcombine.high %v755_v48, %v763_v33  ;;  %v816_v4 = vcombine.low %v480_v17, %v2338_v50  ;;  %v789_v31 = vrot.slane %v782_v43, %v2462_v57  ;;  %v2566_v59 = vrot.slane %v730_v7, %v2492_v32 }
  0xa6   : > { %v488_v54 = vpack.i.b16 %v487_v38, %v486_v51  ;;  %v790_v55 = vcombine.low %v484_v9, %v500_v52  ;;  %v772_v63 = vrot.slane %v764_v22, %v2492_v32 }
  0xa7   : > { %v2549_v35 = vpop.permute.xlu1 %357  ;;  %v2551_v41 = vpop.permute.xlu0 %353  ;;  %v823_v37 = vrot.slane %v816_v4, %v2462_v57  ;;  %2992 = vst [vmem:[#allocation2_spill] sm:$0xff] %v2566_v59  ;;  %v2578_v21 = vrot.slane %v765_v2, %v2492_v32  ;;  %v672_v2 = vpack.i.b16 %v2372_v10, %v2377_v61 }
  0xa8   : > { %v797_v28 = vrot.slane %v790_v55, %v2462_v57  ;;  %v824_v42 = vcombine.low %v488_v54, %v2342_v53  ;;  %1566 = vrot.lane.b32.xlu0 %v1968_v46, %s2086_s24  ;;  %v745_v53 = vrot.slane %v731_v25, %v2492_v32  ;;  %v640_v54 = vpack.i.b16 %v2549_v35, %v2551_v41 }
  0xaa   : > { %v798_v14 = vcombine.low %v789_v31, %v797_v28  ;;  %v799_v52 = vcombine.high %v789_v31, %v797_v28  ;;  %v831_v50 = vrot.slane %v824_v42, %v2462_v57  ;;  %v680_v28 = vpack.i.b16 %v2386_v6, %v2390_v20 }
  0xab   : > { %v2561_v58 = vpop.permute.xlu1 %365  ;;  %v2563_v1 = vpop.permute.xlu0 %361 }
  0xac   : > { %v2569_v3 = vrot.slane %v798_v14, %v2492_v32  ;;  %1604 = vrot.lane.b32.xlu0 %v2009_v47, %s2087_s25  ;;  %v813_v60 = vrot.slane %v799_v52, %v2492_v32  ;;  %v832_v18 = vcombine.low %v823_v37, %v831_v50  ;;  %v833_v13 = vcombine.high %v823_v37, %v831_v50 }
  0xad   : > { %v648_v38 = vpack.i.b16 %v2561_v58, %v2563_v1 }
  0xae   : > { %2993 = vst [vmem:[#allocation3_spill] sm:$0xff] %v2569_v3  ;;  %v1994_v62 = vcombine.high %v2566_v59, %v2569_v3  ;;  %v1953_v44 = vcombine.low %v745_v53, %v813_v60  ;;  %v2000_v46 = vcombine.high %v745_v53, %v813_v60  ;;  %v840_v47 = vrot.slane %v832_v18, %v2492_v32 }
  0xaf   : > { %v2582_v8 = vpop.permute.xlu1 %373  ;;  %v2584_v39 = vpop.permute.xlu0 %369  ;;  %v2588_v7 = vrot.slane %v833_v13, %v2492_v32 }
  0xb0   : > { %1439 = vrot.lane.b32.xlu1 %v1994_v62, %s2084_s22  ;;  %v1944_v25 = vcombine.low %v772_v63, %v840_v47  ;;  %v1997_v33 = vcombine.high %v772_v63, %v840_v47  ;;  %v656_v9 = vpack.i.b16 %v2582_v8, %v2584_v39 }
  0xb1   : > { %v1956_v48 = vcombine.low %v2578_v21, %v2588_v7 }
  0xb2   : > { %v1190_v31 = vcombine.low %v640_v54, %v656_v9  ;;  %v674_v54 = vshrl.u32 %v2377_v61, 16  ;;  %v659_v61 = vshrl.u32 %v2582_v8, 16 }
  0xb3   : > { %v2595_v24 = vpop.permute.xlu1 %381  ;;  %v2597_v34 = vpop.permute.xlu0 %377 }
  0xb4   : > { %v664_v43 = vpack.i.b16 %v2595_v24, %v2597_v34  ;;  %1477 = vrot.lane.b32.xlu1 %v1953_v44, %s2085_s23  ;;  %v2633_v5 = vrot.slane %v1190_v31, %v2462_v57 }
  0xb6   : > { %v1198_v55 = vcombine.low %v648_v38, %v664_v43 }
  0xb7   : > { %v2606_v51 = vpop.permute.xlu1 %424  ;;  %v2608_v22 = vpop.permute.xlu0 %420 }
  0xb8   : > { %v688_v4 = vpack.i.b16 %v2606_v51, %v2608_v22  ;;  %1661 = vrot.lane.b32.xlu1 %v2012_v11, %s2088_s26  ;;  %v2627_v52 = vrot.slane %v1198_v55, %v2462_v57  ;;  %v683_v55 = vshrl.u32 %v2386_v6, 16  ;;  %v658_v6 = vshrl.u32 %v2584_v39, 16 }
  0xba   : > { %v1258_v50 = vcombine.low %v672_v2, %v688_v4  ;;  %v1206_v60 = vcombine.low %v2633_v5, %v2627_v52  ;;  %v682_v2 = vshrl.u32 %v2390_v20, 16  ;;  %v660_v27 = vpack.i.b16 %v659_v61, %v658_v6 }
  0xbb   : > { %v2622_v42 = vpop.permute.xlu1 %432  ;;  %v2624_v14 = vpop.permute.xlu0 %428 }
  0xbc   : > { %v696_v37 = vpack.i.b16 %v2622_v42, %v2624_v14  ;;  %1515 = vrot.lane.b32.xlu1 %v2000_v46, %s2088_s26  ;;  %v2642_v18 = vrot.slane %v1258_v50, %v2462_v57  ;;  %v2656_v46 = vrot.slane %v1206_v60, %v2492_v32  ;;  %v550_v50 = vshrl.u32 %v2440_v40, 16 }
  0xbd   : > { %v666_v60 = vshrl.u32 %v2597_v34, 16 }
  0xbe   : > { %v1266_v30 = vcombine.low %v680_v28, %v696_v37  ;;  %2994 = vst [vmem:[#allocation4_spill] sm:$0xff] %v2656_v46  ;;  %v551_v28 = vshrl.u32 %v2436_v36, 16  ;;  %v643_v37 = vshrl.u32 %v2549_v35, 16  ;;  %v690_v35 = vshrl.u32 %v2608_v22, 16 }
  0xbf   : > { %v2635_v11 = vpop.permute.xlu1 %355  ;;  %v2637_v53 = vpop.permute.xlu0 %351  ;;  %v684_v22 = vpack.i.b16 %v683_v55, %v682_v2  ;;  %v2997_v55 = vcombine.high %v2578_v21, %v2588_v7 }
  0xc0   : > { %v2645_v13 = vrot.slane %v1266_v30, %v2462_v57  ;;  %1420 = vrot.lane.b32.xlu1 %v1944_v25, %s2086_s24  ;;  %v667_v30 = vshrl.u32 %v2595_v24, 16  ;;  %v650_v24 = vshrl.u32 %v2563_v1, 16  ;;  %v548_v1 = vpack.i.b16 %v2436_v36, %v2440_v40 }
  0xc1   : > { %v552_v40 = vpack.i.b16 %v551_v28, %v550_v50 }
  0xc2   : > { %v1274_v62 = vcombine.low %v2642_v18, %v2645_v13  ;;  %v668_v17 = vpack.i.b16 %v667_v30, %v666_v60 }
  0xc3   : > { %v2650_v63 = vpop.permute.xlu1 %363  ;;  %v2652_v44 = vpop.permute.xlu0 %359 }
  0xc4   : > { %1458 = vrot.lane.b32.xlu1 %v1997_v33, %s2087_s25  ;;  %v2659_v47 = vrot.slane %v1274_v62, %v2492_v32  ;;  %v675_v33 = vshrl.u32 %v2372_v10, 16  ;;  %v651_v10 = vshrl.u32 %v2561_v58, 16  ;;  %v691_v62 = vshrl.u32 %v2606_v51, 16 }
  0xc5   : > { %v516_v58 = vpack.i.b16 %v2650_v63, %v2652_v44 }
  0xc6   : > { %2995 = vst [vmem:[#allocation5_spill] sm:$0xff] %v2659_v47  ;;  %v2007_v43 = vcombine.high %v2656_v46, %v2659_v47  ;;  %v676_v51 = vpack.i.b16 %v675_v33, %v674_v54  ;;  %v692_v26 = vpack.i.b16 %v691_v62, %v690_v35  ;;  %v652_v12 = vpack.i.b16 %v651_v10, %v650_v24 }
  0xc7   : > { %v2665_v38 = vpop.permute.xlu1 %371  ;;  %v2667_v9 = vpop.permute.xlu0 %367 }
  0xc8   : > { %1587 = vrot.lane.b32.xlu0 %v2007_v43, %s2084_s22  ;;  %1642 = vrot.lane.b32.xlu1 %v1980_v45, %s2089_s27  ;;  %v642_v45 = vshrl.u32 %v2551_v41, 16  ;;  %v699_v41 = vshrl.u32 %v2622_v42, 16  ;;  %v524_v8 = vpack.i.b16 %v2665_v38, %v2667_v9  ;;  %v508_v42 = vpack.i.b16 %v2635_v11, %v2637_v53 }
  0xc9   : > { %v526_v50 = vshrl.u32 %v2667_v9, 16  ;;  %v511_v9 = vshrl.u32 %v2635_v11, 16 }
  0xca   : > { %v850_v47 = vcombine.low %v508_v42, %v524_v8 }
  0xcb   : > { %v2678_v4 = vpop.permute.xlu1 %379  ;;  %v2680_v31 = vpop.permute.xlu0 %375 }
  0xcc   : > { %1496 = vrot.lane.b32.xlu1 %v1956_v48, %s2089_s27  ;;  %v532_v20 = vpack.i.b16 %v2678_v4, %v2680_v31  ;;  %v698_v48 = vshrl.u32 %v2624_v14, 16  ;;  %v2722_v16 = vrot.slane %v850_v47, %v2462_v57  ;;  %v535_v7 = vshrl.u32 %v2678_v4, 16 }
  0xcd   : > { %v534_v28 = vshrl.u32 %v2680_v31, 16  ;;  %v527_v47 = vshrl.u32 %v2665_v38, 16  ;;  %v1207_v31 = vcombine.high %v2633_v5, %v2627_v52  ;;  %v510_v52 = vshrl.u32 %v2637_v53, 16 }
  0xce   : > { %v858_v14 = vcombine.low %v516_v58, %v532_v20  ;;  %v1275_v20 = vcombine.high %v2642_v18, %v2645_v13 }
  0xcf   : > { %v423_v39 = vpop.permute.xlu1 %422  ;;  %v419_v43 = vpop.permute.xlu0 %418  ;;  %v536_v5 = vpack.i.b16 %v535_v7, %v534_v28  ;;  %v512_v42 = vpack.i.b16 %v511_v9, %v510_v52 }
  0xd0   : > { %v559_v25 = vshrl.u32 %v423_v39, 16  ;;  %v556_v34 = vpack.i.b16 %v423_v39, %v419_v43  ;;  %v558_v15 = vshrl.u32 %v419_v43, 16  ;;  %1680 = vrot.lane.b32.xlu1 %v2015_v49, %s2090_s28  ;;  %v644_v39 = vpack.i.b16 %v643_v37, %v642_v45 }
  0xd1   : > { %v700_v43 = vpack.i.b16 %v699_v41, %v698_v48  ;;  %v2719_v36 = vrot.slane %v858_v14, %v2462_v57  ;;  %v1292_v37 = vcombine.low %v676_v51, %v692_v26  ;;  %v528_v48 = vpack.i.b16 %v527_v47, %v526_v50 }
  0xd2   : > { %v560_v46 = vpack.i.b16 %v559_v25, %v558_v15  ;;  %v918_v49 = vcombine.low %v2996_v23, %v556_v34  ;;  %v1224_v15 = vcombine.low %v644_v39, %v660_v27  ;;  %v1232_v25 = vcombine.low %v652_v12, %v668_v17 }
  0xd3   : > { %v431_v3 = vpop.permute.xlu1 %430  ;;  %v427_v59 = vpop.permute.xlu0 %426  ;;  %v1300_v10 = vcombine.low %v684_v22, %v700_v43  ;;  %v518_v17 = vshrl.u32 %v2652_v44, 16  ;;  %v2772_v11 = vrot.slane %v1292_v37, %v2462_v57  ;;  %v2780_v51 = vrot.slane %v1207_v31, %v2492_v32 }
  0xd4   : > { %v567_v33 = vshrl.u32 %v431_v3, 16  ;;  %v564_v54 = vpack.i.b16 %v431_v3, %v427_v59  ;;  %1534 = vrot.lane.b32.xlu1 %v2997_v55, %s2090_s28  ;;  %v566_v2 = vshrl.u32 %v427_v59, 16  ;;  %v952_v19 = vcombine.low %v2418_v29, %v560_v46 }
  0xd5   : > { %v925_v27 = vrot.slane %v918_v49, %v2462_v57  ;;  %v519_v59 = vshrl.u32 %v2650_v63, 16  ;;  %v866_v29 = vcombine.low %v2722_v16, %v2719_v36  ;;  %v2754_v38 = vrot.slane %v1300_v10, %v2462_v57 }
  0xd6   : > { %v926_v45 = vcombine.low %v548_v1, %v564_v54  ;;  %v568_v3 = vpack.i.b16 %v567_v33, %v566_v2  ;;  %v2744_v63 = vrot.slane %v952_v19, %v2462_v57  ;;  %v2769_v41 = vrot.slane %v1224_v15, %v2462_v57 }
  0xd7   : > { %v2725_v61 = vpop.permute.xlu1 %436  ;;  %v2727_v21 = vpop.permute.xlu0 %434  ;;  %v2759_v18 = vrot.slane %v866_v29, %v2492_v32  ;;  %v520_v53 = vpack.i.b16 %v519_v59, %v518_v17  ;;  %v2775_v58 = vrot.slane %v1232_v25, %v2462_v57  ;;  %v2783_v22 = vrot.slane %v1275_v20, %v2492_v32 }
  0xd8   : > { %v933_v26 = vrot.slane %v926_v45, %v2462_v57  ;;  %v960_v46 = vcombine.low %v552_v40, %v568_v3  ;;  %v867_v14 = vcombine.high %v2722_v16, %v2719_v36  ;;  %v1308_v39 = vcombine.low %v2772_v11, %v2754_v38 }
  0xd9   : > { %v892_v1 = vcombine.low %v520_v53, %v536_v5  ;;  %v705_v43 = vshrl.u32 %v2725_v61, 16  ;;  %v573_v12 = vshrl.u32 %v2727_v21, 16  ;;  %v884_v33 = vcombine.low %v512_v42, %v528_v48 }
  0xda   : > { %v934_v6 = vcombine.low %v925_v27, %v933_v26  ;;  %v935_v4 = vcombine.high %v925_v27, %v933_v26  ;;  %v2747_v44 = vrot.slane %v960_v46, %v2462_v57  ;;  %v1978_v15 = vcombine.low %v2780_v51, %v2783_v22 }
  0xdb   : > { %v2749_v30 = vpop.permute.xlu1 %440  ;;  %v2751_v60 = vpop.permute.xlu0 %438  ;;  %v2802_v37 = vrot.slane %v892_v1, %v2462_v57  ;;  %v1240_v16 = vcombine.low %v2769_v41, %v2775_v58  ;;  %v2808_v7 = vrot.slane %v867_v14, %v2492_v32  ;;  %v891_v28 = vrot.slane %v884_v33, %v2462_v57 }
  0xdc   : > { %v2762_v13 = vrot.slane %v934_v6, %v2492_v32  ;;  %v968_v62 = vcombine.low %v2744_v63, %v2747_v44  ;;  %v969_v35 = vcombine.high %v2744_v63, %v2747_v44  ;;  %v706_v23 = vshrl.u32 %v2749_v30, 16 }
  0xdd   : > { %v574_v49 = vshrl.u32 %v2751_v60, 16  ;;  %v2799_v25 = vrot.slane %v935_v4, %v2492_v32  ;;  %v1316_v59 = vrot.slane %v1308_v39, %v2492_v32  ;;  %v1248_v47 = vrot.slane %v1240_v16, %v2492_v32 }
  0xde   : > { %v1995_v34 = vcombine.high %v2759_v18, %v2762_v13  ;;  %v1942_v36 = vcombine.low %v2759_v18, %v2762_v13  ;;  %v707_v19 = vpack.i.b16 %v706_v23, %v705_v43  ;;  %v900_v50 = vcombine.low %v891_v28, %v2802_v37 }
  0xdf   : > { %v445_v8 = vpop.permute.xlu1 %444  ;;  %v443_v24 = vpop.permute.xlu0 %442  ;;  %v575_v3 = vpack.i.b16 %v574_v49, %v573_v12  ;;  %v1954_v29 = vcombine.low %v2808_v7, %v2799_v25  ;;  %v572_v4 = vpack.i.b16 %v2751_v60, %v2727_v21  ;;  %v1969_v9 = vcombine.low %v1248_v47, %v1316_v59 }
  0xe0   : > { %1441 = vrot.lane.b32.xlu0 %v1995_v34, %s2084_s22  ;;  %v711_v54 = vshrl.u32 %v445_v8, 16  ;;  %v579_v55 = vshrl.u32 %v443_v24, 16  ;;  %v2820_v6 = vrot.slane %v707_v19, %v2462_v57  ;;  %v976_v52 = vrot.slane %v968_v62, %v2492_v32 }
  0xe1   : > { %v2825_v31 = vrot.slane %v575_v3, %v2462_v57  ;;  %v908_v60 = vrot.slane %v900_v50, %v2492_v32  ;;  %v993_v34 = vrot.slane %v572_v4, %v2462_v57  ;;  %v2010_v12 = vcombine.high %v1248_v47, %v1316_v59  ;;  %v1788_v4 = vld [vmem:[%s2982_s2] sm:$0xff] }
  0xe2   : > { %v2013_v19 = vcombine.high %v2780_v51, %v2783_v22  ;;  %v2091_v47 = vmov 0  }
  0xe3   : > { %v449_v40 = vpop.permute.xlu1 %448  ;;  %v447_v2 = vpop.permute.xlu0 %446  ;;  %v1998_v33 = vcombine.high %v908_v60, %v976_v52  ;;  %1835 = vmatprep.mubr.bf16.mxu0 %v2091_v47  ;;  %2055 = vset.pattern.permute.xlu0 %v2091_v47 }
  0xe4   : > { %v712_v45 = vshrl.u32 %v449_v40, 16  ;;  %v580_v10 = vshrl.u32 %v447_v2, 16  ;;  %1625 = vrot.lane.b32.xlu0 %v1978_v15, %s2085_s23  ;;  %v578_v17 = vpack.i.b16 %v447_v2, %v443_v24  ;;  %v710_v5 = vpack.i.b16 %v449_v40, %v445_v8 }
  0xe5   : > { %v704_v24 = vpack.i.b16 %v2749_v30, %v2725_v61  ;;  %v1945_v8 = vcombine.low %v908_v60, %v976_v52  ;;  %v1309_v61 = vcombine.high %v2772_v11, %v2754_v38  ;;  %v901_v40 = vcombine.high %v891_v28, %v2802_v37 }
  0xe6   : > { %v713_v27 = vpack.i.b16 %v712_v45, %v711_v54  ;;  %v581_v26 = vpack.i.b16 %v580_v10, %v579_v55  ;;  %v1001_v48 = vrot.slane %v578_v17, %v2462_v57  ;;  %v1341_v42 = vrot.slane %v710_v5, %v2462_v57 }
  0xe7   : > { %v1333_v43 = vrot.slane %v704_v24, %v2462_v57  ;;  %v1323_v55 = vrot.slane %v1309_v61, %v2492_v32  ;;  %v915_v15 = vrot.slane %v901_v40, %v2492_v32  ;;  %v2998_v24 = vcombine.low %v2502_v0, %v2508_v56 }
  0xe8   : > { %v2815_v46 = vrot.slane %v713_v27, %v2462_v57  ;;  %v2828_v20 = vrot.slane %v581_v26, %v2462_v57  ;;  %1479 = vrot.lane.b32.xlu0 %v1954_v29, %s2085_s23  ;;  %v1002_v14 = vcombine.low %v993_v34, %v1001_v48  ;;  %v1241_v57 = vcombine.high %v2769_v41, %v2775_v58 }
  0xe9   : > { %v1342_v30 = vcombine.low %v1333_v43, %v1341_v42  ;;  %v983_v58 = vrot.slane %v969_v35, %v2492_v32  ;;  %v1003_v45 = vcombine.high %v993_v34, %v1001_v48  ;;  %v1343_v37 = vcombine.high %v1333_v43, %v1341_v42 }
  0xea   : > { %v1376_v53 = vcombine.low %v2820_v6, %v2815_v46  ;;  %v1036_v21 = vcombine.low %v2825_v31, %v2828_v20  ;;  %v2851_v49 = vrot.slane %v1002_v14, %v2492_v32  ;;  %v1255_v11 = vrot.slane %v1241_v57, %v2492_v32 }
  0xeb   : > { %v2861_v38 = vrot.slane %v1342_v30, %v2492_v32  ;;  %v1957_v10 = vcombine.low %v915_v15, %v983_v58  ;;  %v1017_v63 = vrot.slane %v1003_v45, %v2492_v32  ;;  %v1377_v44 = vcombine.high %v2820_v6, %v2815_v46 }
  0xec   : > { %1568 = vrot.lane.b32.xlu0 %v1969_v9, %s2086_s24  ;;  %v1044_v62 = vrot.slane %v1036_v21, %v2492_v32  ;;  %v1384_v39 = vrot.slane %v1376_v53, %v2492_v32  ;;  %v1996_v54 = vcombine.high %v2851_v49, %v2851_v49  ;;  %v1981_v2 = vcombine.low %v1255_v11, %v1323_v55 }
  0xed   : > { %v2008_v41 = vcombine.high %v2861_v38, %v2861_v38  ;;  %v2001_v35 = vcombine.high %v2808_v7, %v2799_v25  ;;  %v1955_v28 = vcombine.low %v1017_v63, %v1017_v63  ;;  %v1357_v27 = vrot.slane %v1343_v37, %v2492_v32 }
  0xee   : > { %v1946_v1 = vcombine.low %v1044_v62, %v1044_v62  ;;  %v1970_v23 = vcombine.low %v1384_v39, %v1384_v39  ;;  %v1999_v16 = vcombine.high %v1044_v62, %v1044_v62  ;;  %v2011_v3 = vcombine.high %v1384_v39, %v1384_v39  ;;  %v3000_v39 = vld [vmem:[#allocation3_spill] sm:$0xff] }
  0xef   : > { %v1037_v51 = vcombine.high %v2825_v31, %v2828_v20  ;;  %v2016_v22 = vcombine.high %v1255_v11, %v1323_v55  ;;  %v1979_v26 = vcombine.low %v1357_v27, %v1357_v27  ;;  %v1391_v59 = vrot.slane %v1377_v44, %v2492_v32 }
  0xf0   : > { %1422 = vrot.lane.b32.xlu0 %v1945_v8, %s2086_s24  ;;  %1424 = vrot.lane.b32.xlu1 %v1946_v1, %s2086_s24  ;;  %v2004_v17 = vcombine.high %v915_v15, %v983_v58  ;;  %v2014_v46 = vcombine.high %v1357_v27, %v1357_v27  ;;  %v2002_v50 = vcombine.high %v1017_v63, %v1017_v63  ;;  %v2999_v1 = vld [vmem:[#allocation2_spill] sm:$0xff] }
  0xf1   : > { %v1982_v25 = vcombine.low %v1391_v59, %v1391_v59  ;;  %v1051_v7 = vrot.slane %v1037_v51, %v2492_v32  ;;  %v2017_v6 = vcombine.high %v1391_v59, %v1391_v59  ;;  %v3001_v43 = vcombine.low %v2999_v1, %v3000_v39  ;;  %v3003_v59 = vld [vmem:[#allocation5_spill] sm:$0xff] }
  0xf2   : > { %v1943_v1 = vcombine.low %v2851_v49, %v2851_v49 }
  0xf3   : > { %v1958_v29 = vcombine.low %v1051_v7, %v1051_v7  ;;  %v2005_v32 = vcombine.high %v1051_v7, %v1051_v7 }
  0xf4   : > { %1606 = vrot.lane.b32.xlu0 %v2010_v12, %s2087_s25  ;;  %1570 = vrot.lane.b32.xlu1 %v1970_v23, %s2086_s24 }
  0xf8   : > { %1460 = vrot.lane.b32.xlu0 %v1998_v33, %s2087_s25  ;;  %1443 = vrot.lane.b32.xlu1 %v1996_v54, %s2084_s22 }
  0xfc   : > { %1644 = vrot.lane.b32.xlu0 %v1981_v2, %s2089_s27  ;;  %1589 = vrot.lane.b32.xlu1 %v2008_v41, %s2084_s22 }
 0x100   : > { %1498 = vrot.lane.b32.xlu0 %v1957_v10, %s2089_s27  ;;  %1462 = vrot.lane.b32.xlu1 %v1999_v16, %s2087_s25 }
 0x104   : > { %1663 = vrot.lane.b32.xlu0 %v2013_v19, %s2088_s26  ;;  %1608 = vrot.lane.b32.xlu1 %v2011_v3, %s2087_s25 }
 0x108   : > { %1517 = vrot.lane.b32.xlu0 %v2001_v35, %s2088_s26  ;;  %1481 = vrot.lane.b32.xlu1 %v1955_v28, %s2085_s23 }
 0x10c   : > { %1682 = vrot.lane.b32.xlu0 %v2016_v22, %s2090_s28  ;;  %1627 = vrot.lane.b32.xlu1 %v1979_v26, %s2085_s23  ;;  %v3002_v26 = vld [vmem:[#allocation4_spill] sm:$0xff] }
 0x110   : > { %1536 = vrot.lane.b32.xlu0 %v2004_v17, %s2090_s28  ;;  %1646 = vrot.lane.b32.xlu1 %v1982_v25, %s2089_s27  ;;  %v3004_v17 = vcombine.low %v3002_v26, %v3003_v59 }
 0x112   : > { %v1586_v20 = vpop.permute.xlu0 %1585 }
 0x114   : > { %1500 = vrot.lane.b32.xlu0 %v1958_v29, %s2089_s27  ;;  %1665 = vrot.lane.b32.xlu1 %v2014_v46, %s2088_s26 }
 0x116   : > { %v1624_v5 = vpop.permute.xlu0 %1623 }
 0x118   : > { %1519 = vrot.lane.b32.xlu0 %v2002_v50, %s2088_s26  ;;  %1684 = vrot.lane.b32.xlu1 %v2017_v6, %s2090_s28 }
 0x11a   : > { %v1567_v48 = vpop.permute.xlu0 %1566 }
 0x11b   : > { %v1742_v34 = vsel %vm1686_vm6, %v2998_v24, %v1567_v48  ;;  %v1967_v24 = vcombine.low %v2861_v38, %v2861_v38 }
 0x11c   : > { %1538 = vrot.lane.b32.xlu0 %v2005_v32, %s2090_s28  ;;  %v1750_v8 = vsel %vm1696_vm7, %v1742_v34, %v1586_v20 }
 0x11e   : > { %v1605_v62 = vpop.permute.xlu0 %1604 }
 0x11f   : > { %v1756_v14 = vsel %vm1703_vm8, %v1750_v8, %v1605_v62 }
 0x120   : > { %1791 = vperm.xlu0 %2055, %v1788_v4   ;;  %v1762_v0 = vsel %vm1710_vm9, %v1756_v14, %v1624_v5 }
 0x122   : > { %v1440_v31 = vpop.permute.xlu1 %1439 }
 0x126   : > { %v1478_v9 = vpop.permute.xlu1 %1477 }
 0x12a   : > { %v1662_v52 = vpop.permute.xlu1 %1661 }
 0x12e   : > { %v1516_v53 = vpop.permute.xlu1 %1515 }
 0x132   : > { %v1421_v21 = vpop.permute.xlu1 %1420 }
 0x133   : > { %v1689_v61 = vsel %vm1686_vm6, %v3001_v43, %v1421_v21 }
 0x134   : > { %v1698_v30 = vsel %vm1696_vm7, %v1689_v61, %v1440_v31 }
 0x136   : > { %v1459_v60 = vpop.permute.xlu1 %1458 }
 0x137   : > { %v1705_v12 = vsel %vm1703_vm8, %v1698_v30, %v1459_v60 }
 0x138   : > { %v1712_v57 = vsel %vm1710_vm9, %v1705_v12, %v1478_v9 }
 0x13a   : > { %v1643_v42 = vpop.permute.xlu1 %1642  ;;  %v1588_v58 = vpop.permute.xlu0 %1587 }
 0x13b   : > { %v1768_v23 = vsel %vm1717_vm10, %v1762_v0, %v1643_v42 }
 0x13c   : > { %v1774_v54 = vsel %vm1724_vm11, %v1768_v23, %v1662_v52 }
 0x13e   : > { %v1497_v56 = vpop.permute.xlu1 %1496 }
 0x13f   : > { %v1719_v55 = vsel %vm1717_vm10, %v1712_v57, %v1497_v56 }
 0x140   : > { %v1726_v2 = vsel %vm1724_vm11, %v1719_v55, %v1516_v53 }
 0x142   : > { %v1681_v33 = vpop.permute.xlu1 %1680 }
 0x143   : > { %v1780_v11 = vsel %vm1731_vm12, %v1774_v54, %v1681_v33 }
 0x144   : > { %1803 = vmatprep.subr.bf16.mxu0 %v1780_v11 }
 0x146   : > { %v1535_v40 = vpop.permute.xlu1 %1534 }
 0x147   : > { %v1733_v41 = vsel %vm1731_vm12, %v1726_v2, %v1535_v40  ;;  %v1787_v2 = vld [vmem:[%s2981_s1] sm:$0xf] }
 0x148   : > { %1804 = vmatpush1.bf16.msra.mxu0 %v1733_v41 }
 0x152   : > { %v1442_v15 = vpop.permute.xlu0 %1441 }
 0x156   : > { %v1626_v45 = vpop.permute.xlu0 %1625 }
 0x15a   : > { %v1480_v10 = vpop.permute.xlu0 %1479 }
 0x15e   : > { %v1569_v16 = vpop.permute.xlu0 %1568 }
 0x15f   : > { %v1745_v25 = vsel %vm1686_vm6, %v3004_v17, %v1569_v16 }
 0x160   : > { %v1752_v46 = vsel %vm1696_vm7, %v1745_v25, %v1588_v58 }
 0x162   : > { %v1423_v37 = vpop.permute.xlu0 %1422  ;;  %v1425_v19 = vpop.permute.xlu1 %1424 }
 0x163   : > { %v1692_v47 = vsel %vm1686_vm6, %v1942_v36, %v1423_v37  ;;  %v1695_v61 = vsel %vm1686_vm6, %v1943_v1, %v1425_v19 }
 0x164   : > { %v1700_v4 = vsel %vm1696_vm7, %v1692_v47, %v1442_v15 }
 0x166   : > { %v1607_v3 = vpop.permute.xlu0 %1606  ;;  %v1571_v63 = vpop.permute.xlu1 %1570 }
 0x167   : > { %v1758_v50 = vsel %vm1703_vm8, %v1752_v46, %v1607_v3  ;;  %v1748_v62 = vsel %vm1686_vm6, %v1967_v24, %v1571_v63 }
 0x168   : > { %v1764_v31 = vsel %vm1710_vm9, %v1758_v50, %v1626_v45 }
 0x16a   : > { %v1461_v44 = vpop.permute.xlu0 %1460  ;;  %v1444_v35 = vpop.permute.xlu1 %1443 }
 0x16b   : > { %v1707_v20 = vsel %vm1703_vm8, %v1700_v4, %v1461_v44  ;;  %v1702_v30 = vsel %vm1696_vm7, %v1695_v61, %v1444_v35 }
 0x16c   : > { %v1714_v13 = vsel %vm1710_vm9, %v1707_v20, %v1480_v10 }
 0x16e   : > { %v1645_v28 = vpop.permute.xlu0 %1644  ;;  %v1590_v27 = vpop.permute.xlu1 %1589 }
 0x16f   : > { %v1770_v9 = vsel %vm1717_vm10, %v1764_v31, %v1645_v28  ;;  %v1754_v8 = vsel %vm1696_vm7, %v1748_v62, %v1590_v27 }
 0x172   : > { %v1499_v51 = vpop.permute.xlu0 %1498  ;;  %v1463_v22 = vpop.permute.xlu1 %1462 }
 0x173   : > { %v1721_v36 = vsel %vm1717_vm10, %v1714_v13, %v1499_v51  ;;  %v1709_v23 = vsel %vm1703_vm8, %v1702_v30, %v1463_v22 }
 0x176   : > { %v1664_v7 = vpop.permute.xlu0 %1663  ;;  %v1609_v29 = vpop.permute.xlu1 %1608 }
 0x177   : > { %v1776_v52 = vsel %vm1724_vm11, %v1770_v9, %v1664_v7  ;;  %v1760_v39 = vsel %vm1703_vm8, %v1754_v8, %v1609_v29 }
 0x17a   : > { %v1518_v6 = vpop.permute.xlu0 %1517  ;;  %v1482_v32 = vpop.permute.xlu1 %1481 }
 0x17b   : > { %v1728_v48 = vsel %vm1724_vm11, %v1721_v36, %v1518_v6  ;;  %v1716_v57 = vsel %vm1710_vm9, %v1709_v23, %v1482_v32 }
 0x17e   : > { %v1683_v5 = vpop.permute.xlu0 %1682  ;;  %v1628_v53 = vpop.permute.xlu1 %1627 }
 0x17f   : > { %v1783_v18 = vsel %vm1731_vm12, %v1776_v52, %v1683_v5  ;;  %v1766_v43 = vsel %vm1710_vm9, %v1760_v39, %v1628_v53 }
 0x180   : > { %1805 = vmatprep.subr.bf16.mxu0 %v1783_v18 }
 0x182   : > { %v1537_v21 = vpop.permute.xlu0 %1536  ;;  %v1647_v60 = vpop.permute.xlu1 %1646 }
 0x183   : > { %v1736_v34 = vsel %vm1731_vm12, %v1728_v48, %v1537_v21  ;;  %v1772_v38 = vsel %vm1717_vm10, %v1766_v43, %v1647_v60 }
 0x184   : > { %1806 = vmatpush1.bf16.msra.mxu0 %v1736_v34 }
 0x186   : > { %v1501_v42 = vpop.permute.xlu0 %1500  ;;  %v1666_v14 = vpop.permute.xlu1 %1665 }
 0x187   : > { %v1778_v0 = vsel %vm1724_vm11, %v1772_v38, %v1666_v14  ;;  %v1723_v33 = vsel %vm1717_vm10, %v1716_v57, %v1501_v42 }
 0x18a   : > { %v1520_v56 = vpop.permute.xlu0 %1519  ;;  %v1685_v12 = vpop.permute.xlu1 %1684 }
 0x18b   : > { %v1786_v49 = vsel %vm1731_vm12, %v1778_v0, %v1685_v12  ;;  %v1730_v54 = vsel %vm1724_vm11, %v1723_v33, %v1520_v56 }
 0x18c   : > { %1989 = vmatprep.subr.msk.bf16.mxu0 %vm1798_vm13, %v1786_v49 }
 0x18e   : > { %v1539_v55 = vpop.permute.xlu0 %1538 }
 0x18f   : > { %v1739_v11 = vsel %vm1731_vm12, %v1730_v54, %v1539_v55 }
 0x190   : > { %v1799_v40 = vsel %vm1798_vm13, %v1739_v11, 0 }
 0x191   : > { %1808 = vmatpush1.bf16.msra.mxu0 %v1799_v40 }
 0x194   : > { %1990 = vmatmul.mubr.msk.bf16.vlgmr.msra.gmra.mrb[0].mxu0 %vm1794_vm14, %v1787_v2 }
 0x19f   : > { %v1792_v41 = vpop.permute.xlu0 %1791 }
 0x267   : > { %v1837_v58 = vpop.f32.mrb[0].mxu0 }
 0x268   : > { %v1838_v15 = vadd.f32 %v1837_v58, %v1792_v41  ;;  %v1839_v45 = vpop.f32.mrb[1].mxu0 }
 0x269   : > { %v1840_v10 = vadd.f32 %v1839_v45, %v1792_v41  ;;  %v1841_v16 = vpop.f32.mrb[2].mxu0 }
 0x26a   : > { %1844 = vst [vmem:[%s192_s9] sm:$0xff] %v1838_v15  ;;  %v1842_v37 = vpop.f32.mrb[3].mxu0 }
 0x26b   : > { %1845 = vst [vmem:[%s192_s9 + $0x8] sm:$0xff] %v1840_v10 }
 0x26c PF: > { %s13_s14 = sadd.s32 1, %s2078_s14   ;;  %s3005_s12 = smov %s2074_s13 }
 0x26d   : > { %p10_p5 = scmp.ge.s32.totalorder %s13_s14, 4   ;;  %s3006_s13 = smov %s3008_s15 }
 0x26f   :  { %12 = sbr.rel (!%p10_p5) target bundleno = 2 (0x2), region = 63 }

</bundles_post_ra>
